<compile_context>
chip_gen: v7x
topology: tpu7x:2x2x1
jax: 0.10.0
libtpu: 0.0.40
codegen_flags: <defaults>
</compile_context>

<pallas_src>
import jax
import jax.numpy as jnp
from jax.experimental import pallas as pl
from jax.experimental.pallas import tpu as pltpu


def _round_up(x, m):
    return (x + m - 1) // m * m


def _proprio_kernel(x_ref,
                    w1_ref, b1_ref,
                    w2_ref, b2_ref,
                    w3_ref, b3_ref,
                    w4_ref, b4_ref,
                    o_ref):
    """Fused MLP tile: 4x [bf16 MXU matmul -> f32 bias-add -> LeakyReLU(0.1)].

    alpha is pre-folded into w1; w4/b4 are lane-padded so o_ref is 128-lane dense.
    """

    def lrelu(v):
        return jnp.where(v >= 0, v, 0.1 * v)

    h = x_ref[...].astype(jnp.bfloat16)  # bf16 MXU operand; accumulate in f32
    h = lrelu(jnp.dot(h, w1_ref[...], preferred_element_type=jnp.float32)
              + b1_ref[...])
    h = lrelu(jnp.dot(h.astype(jnp.bfloat16), w2_ref[...],
                      preferred_element_type=jnp.float32) + b2_ref[...])
    h = lrelu(jnp.dot(h.astype(jnp.bfloat16), w3_ref[...],
                      preferred_element_type=jnp.float32) + b3_ref[...])
    h = lrelu(jnp.dot(h.astype(jnp.bfloat16), w4_ref[...],
                      preferred_element_type=jnp.float32) + b4_ref[...])
    o_ref[...] = h.astype(o_ref.dtype)


def prepare_params(params, *, alpha):
    """One-time parameter prep: fold alpha into w1, cast weights to bf16,
    zero-pad the last layer to a multiple of 128 output lanes."""
    w1, b1, w2, b2, w3, b3, w4, b4 = params
    out_dim = w4.shape[1]
    out_pad = _round_up(out_dim, 128)
    pad = out_pad - out_dim
    w4p = jnp.pad(w4, ((0, 0), (0, pad)))
    b4p = jnp.pad(b4, ((0, 0), (0, pad)))
    prepared = (
        (alpha * w1).astype(jnp.bfloat16), b1.astype(jnp.float32),
        w2.astype(jnp.bfloat16), b2.astype(jnp.float32),
        w3.astype(jnp.bfloat16), b3.astype(jnp.float32),
        w4p.astype(jnp.bfloat16), b4p.astype(jnp.float32),
    )
    return prepared, out_dim


def proprio_encoder_forward(proprio, prepared_params, out_dim, *, block_b=2048):
    """JAX wrapper matching ProprioEncoder.forward.

    proprio: (B, 8) float32
    returns: (B, 2*z_dim, 1) float32
    """
    w1, b1, w2, b2, w3, b3, w4, b4 = prepared_params
    B, in_dim = proprio.shape
    out_pad = w4.shape[1]

    # Batch tile: large enough to amortize per-step overhead, small enough to
    # stay well inside v7x's default scoped VMEM (working set << 32 MiB).
    tb = min(block_b, _round_up(B, 8))
    b_pad = _round_up(B, tb)
    if b_pad != B:
        proprio = jnp.pad(proprio, ((0, b_pad - B), (0, 0)))

    grid = (pl.cdiv(b_pad, tb),)

    def resident(shape):
        # Same block index every grid step -> stays pinned in VMEM, no re-DMA.
        return pl.BlockSpec(shape, lambda i: (0, 0))

    flops = 2 * b_pad * (in_dim * w1.shape[1]
                         + w1.shape[1] * w2.shape[1]
                         + w2.shape[1] * w3.shape[1]
                         + w3.shape[1] * out_pad)
    param_bytes = sum(int(p.size) * p.dtype.itemsize for p in prepared_params)
    bytes_accessed = (b_pad * in_dim * proprio.dtype.itemsize   # x read
                      + b_pad * out_pad * 4                     # out write (f32)
                      + param_bytes)                            # resident params

    out = pl.pallas_call(
        _proprio_kernel,
        out_shape=jax.ShapeDtypeStruct((b_pad, out_pad), jnp.float32),
        grid=grid,
        in_specs=[
            pl.BlockSpec((tb, in_dim), lambda i: (i, 0)),   # x tile
            resident(w1.shape), resident(b1.shape),
            resident(w2.shape), resident(b2.shape),
            resident(w3.shape), resident(b3.shape),
            resident(w4.shape), resident(b4.shape),
        ],
        out_specs=pl.BlockSpec((tb, out_pad), lambda i: (i, 0)),
        compiler_params=pltpu.CompilerParams(
            dimension_semantics=("parallel",),
        ),
        cost_estimate=pl.CostEstimate(
            flops=flops, transcendentals=0, bytes_accessed=bytes_accessed),
    )(proprio, w1, b1, w2, b2, w3, b3, w4, b4)

    # Slice off batch padding + lane padding, then .unsqueeze(2).
    return out[:B, :out_dim, None]


def make_params(key, z_dim):
    """Deterministic synthetic parameters (shapes from the module's __init__)."""
    # TODO(synk): init_weights() from the original repo is not replicated; shapes/dtypes only.
    dims = [(8, 32), (32, 64), (64, 128), (128, 2 * z_dim)]
    params = []
    for (fan_in, fan_out) in dims:
        key, kw, kb = jax.random.split(key, 3)
        scale = jnp.sqrt(2.0 / fan_in)
        w = scale * jax.random.normal(kw, (fan_in, fan_out), dtype=jnp.float32)
        b = 0.01 * jax.random.normal(kb, (1, fan_out), dtype=jnp.float32)
        params.extend([w, b])
    return tuple(params)


def _reference_forward_f32(proprio, params, *, alpha):
    """Pure-f32 JAX reference (module semantics)."""
    w1, b1, w2, b2, w3, b3, w4, b4 = params

    def lrelu(v):
        return jnp.where(v >= 0, v, 0.1 * v)

    h = alpha * proprio
    h = lrelu(h @ w1 + b1)
    h = lrelu(h @ w2 + b2)
    h = lrelu(h @ w3 + b3)
    h = lrelu(h @ w4 + b4)
    return h[:, :, None]


def _reference_forward_matched(proprio, prepared_params, out_dim):
    """Reference using the same bf16-operand / f32-accumulate recipe as the kernel."""
    w1, b1, w2, b2, w3, b3, w4, b4 = prepared_params

    def lrelu(v):
        return jnp.where(v >= 0, v, 0.1 * v)

    h = proprio.astype(jnp.bfloat16)
    h = lrelu(jnp.dot(h, w1, preferred_element_type=jnp.float32) + b1)
    h = lrelu(jnp.dot(h.astype(jnp.bfloat16), w2,
                      preferred_element_type=jnp.float32) + b2)
    h = lrelu(jnp.dot(h.astype(jnp.bfloat16), w3,
                      preferred_element_type=jnp.float32) + b3)
    h = lrelu(jnp.dot(h.astype(jnp.bfloat16), w4,
                      preferred_element_type=jnp.float32) + b4)
    return h[:, :out_dim, None]


if __name__ == "__main__":
    key = jax.random.PRNGKey(0)
    key, kx = jax.random.split(key)

    B = 8          # batch (small smoke-test size)
    z_dim = 16     # -> output feature dim 2*z_dim = 32
    alpha = 0.5

    proprio = jax.random.normal(kx, (B, 8), dtype=jnp.float32)
    params = make_params(key, z_dim)
    prepared, out_dim = prepare_params(params, alpha=alpha)

    out = proprio_encoder_forward(proprio, prepared, out_dim)
    out = jax.block_until_ready(out)

    assert out.shape == (B, 2 * z_dim, 1), out.shape

    # Apples-to-apples check vs the same bf16-operand recipe.
    ref_matched = _reference_forward_matched(proprio, prepared, out_dim)
    assert jnp.allclose(out, ref_matched, atol=1e-3, rtol=1e-3)

    # Loose check vs the pure-f32 module semantics (bf16 MXU operands drift slightly).
    ref_f32 = _reference_forward_f32(proprio, params, alpha=alpha)
    assert jnp.allclose(out, ref_f32, atol=1e-1, rtol=1e-1)

    print("KERNEL_OK")
</pallas_src>

<mosaic_0001>
module attributes {stable_mosaic.version = 11 : i64} {
  func.func @_proprio_kernel(%arg0: i32, %arg1: memref<8x8xf32, #tpu.memory_space<vmem>>, %arg2: memref<8x32xbf16, #tpu.memory_space<vmem>>, %arg3: memref<1x32xf32, #tpu.memory_space<vmem>>, %arg4: memref<32x64xbf16, #tpu.memory_space<vmem>>, %arg5: memref<1x64xf32, #tpu.memory_space<vmem>>, %arg6: memref<64x128xbf16, #tpu.memory_space<vmem>>, %arg7: memref<1x128xf32, #tpu.memory_space<vmem>>, %arg8: memref<128x128xbf16, #tpu.memory_space<vmem>>, %arg9: memref<1x128xf32, #tpu.memory_space<vmem>>, %arg10: memref<8x128xf32, #tpu.memory_space<vmem>>) attributes {dimension_semantics = [#tpu.dimension_semantics<parallel>], iteration_bounds = array<i64: 1>, scalar_prefetch = 0 : i64, scratch_operands = 0 : i64, tpu.core_type = #tpu.core_type<tc>, window_params = [{transform_indices = @transform_0, window_bounds = array<i64: 8, 8>}, {pipeline_mode = #tpu.pipeline_mode<synchronous>, transform_indices = @transform_1, window_bounds = array<i64: 8, 32>}, {pipeline_mode = #tpu.pipeline_mode<synchronous>, transform_indices = @transform_2, window_bounds = array<i64: 1, 32>}, {pipeline_mode = #tpu.pipeline_mode<synchronous>, transform_indices = @transform_3, window_bounds = array<i64: 32, 64>}, {pipeline_mode = #tpu.pipeline_mode<synchronous>, transform_indices = @transform_4, window_bounds = array<i64: 1, 64>}, {pipeline_mode = #tpu.pipeline_mode<synchronous>, transform_indices = @transform_5, window_bounds = array<i64: 64, 128>}, {pipeline_mode = #tpu.pipeline_mode<synchronous>, transform_indices = @transform_6, window_bounds = array<i64: 1, 128>}, {pipeline_mode = #tpu.pipeline_mode<synchronous>, transform_indices = @transform_7, window_bounds = array<i64: 128, 128>}, {pipeline_mode = #tpu.pipeline_mode<synchronous>, transform_indices = @transform_8, window_bounds = array<i64: 1, 128>}, {transform_indices = @transform_9, window_bounds = array<i64: 8, 128>}]} {
    %c0 = arith.constant 0 : index
    %c0_0 = arith.constant 0 : index
    %0 = vector.load %arg1[%c0, %c0_0] : memref<8x8xf32, #tpu.memory_space<vmem>>, vector<8x8xf32>
    %1 = arith.truncf %0 : vector<8x8xf32> to vector<8x8xbf16>
    %c0_1 = arith.constant 0 : index
    %c0_2 = arith.constant 0 : index
    %2 = vector.load %arg2[%c0_1, %c0_2] : memref<8x32xbf16, #tpu.memory_space<vmem>>, vector<8x32xbf16>
    %cst = arith.constant dense<0.000000e+00> : vector<8x32xf32>
    %3 = tpu.matmul %1, %2, %cst {dimension_numbers = #tpu.dot_dimension_numbers<[1], [0], [0], [1], [0, 0, 1, 1], [], []>} : vector<8x8xbf16>, vector<8x32xbf16>, vector<8x32xf32> -> vector<8x32xf32>
    %c0_3 = arith.constant 0 : index
    %c0_4 = arith.constant 0 : index
    %4 = vector.load %arg3[%c0_3, %c0_4] : memref<1x32xf32, #tpu.memory_space<vmem>>, vector<1x32xf32>
    %5 = vector.broadcast %4 : vector<1x32xf32> to vector<8x32xf32>
    %6 = arith.addf %3, %5 : vector<8x32xf32>
    %cst_5 = arith.constant 0.000000e+00 : f32
    %7 = vector.broadcast %cst_5 : f32 to vector<8x32xf32>
    %8 = arith.cmpf oge, %6, %7 : vector<8x32xf32>
    %cst_6 = arith.constant 1.000000e-01 : f32
    %9 = vector.broadcast %cst_6 : f32 to vector<8x32xf32>
    %10 = arith.mulf %9, %6 : vector<8x32xf32>
    %11 = arith.select %8, %6, %10 : vector<8x32xi1>, vector<8x32xf32>
    %12 = arith.truncf %11 : vector<8x32xf32> to vector<8x32xbf16>
    %c0_7 = arith.constant 0 : index
    %c0_8 = arith.constant 0 : index
    %13 = vector.load %arg4[%c0_7, %c0_8] : memref<32x64xbf16, #tpu.memory_space<vmem>>, vector<32x64xbf16>
    %cst_9 = arith.constant dense<0.000000e+00> : vector<8x64xf32>
    %14 = tpu.matmul %12, %13, %cst_9 {dimension_numbers = #tpu.dot_dimension_numbers<[1], [0], [0], [1], [0, 0, 1, 1], [], []>} : vector<8x32xbf16>, vector<32x64xbf16>, vector<8x64xf32> -> vector<8x64xf32>
    %c0_10 = arith.constant 0 : index
    %c0_11 = arith.constant 0 : index
    %15 = vector.load %arg5[%c0_10, %c0_11] : memref<1x64xf32, #tpu.memory_space<vmem>>, vector<1x64xf32>
    %16 = vector.broadcast %15 : vector<1x64xf32> to vector<8x64xf32>
    %17 = arith.addf %14, %16 : vector<8x64xf32>
    %cst_12 = arith.constant 0.000000e+00 : f32
    %18 = vector.broadcast %cst_12 : f32 to vector<8x64xf32>
    %19 = arith.cmpf oge, %17, %18 : vector<8x64xf32>
    %cst_13 = arith.constant 1.000000e-01 : f32
    %20 = vector.broadcast %cst_13 : f32 to vector<8x64xf32>
    %21 = arith.mulf %20, %17 : vector<8x64xf32>
    %22 = arith.select %19, %17, %21 : vector<8x64xi1>, vector<8x64xf32>
    %23 = arith.truncf %22 : vector<8x64xf32> to vector<8x64xbf16>
    %c0_14 = arith.constant 0 : index
    %c0_15 = arith.constant 0 : index
    %24 = vector.load %arg6[%c0_14, %c0_15] : memref<64x128xbf16, #tpu.memory_space<vmem>>, vector<64x128xbf16>
    %cst_16 = arith.constant dense<0.000000e+00> : vector<8x128xf32>
    %25 = tpu.matmul %23, %24, %cst_16 {dimension_numbers = #tpu.dot_dimension_numbers<[1], [0], [0], [1], [0, 0, 1, 1], [], []>} : vector<8x64xbf16>, vector<64x128xbf16>, vector<8x128xf32> -> vector<8x128xf32>
    %c0_17 = arith.constant 0 : index
    %c0_18 = arith.constant 0 : index
    %26 = vector.load %arg7[%c0_17, %c0_18] : memref<1x128xf32, #tpu.memory_space<vmem>>, vector<1x128xf32>
    %27 = vector.broadcast %26 : vector<1x128xf32> to vector<8x128xf32>
    %28 = arith.addf %25, %27 : vector<8x128xf32>
    %cst_19 = arith.constant 0.000000e+00 : f32
    %29 = vector.broadcast %cst_19 : f32 to vector<8x128xf32>
    %30 = arith.cmpf oge, %28, %29 : vector<8x128xf32>
    %cst_20 = arith.constant 1.000000e-01 : f32
    %31 = vector.broadcast %cst_20 : f32 to vector<8x128xf32>
    %32 = arith.mulf %31, %28 : vector<8x128xf32>
    %33 = arith.select %30, %28, %32 : vector<8x128xi1>, vector<8x128xf32>
    %34 = arith.truncf %33 : vector<8x128xf32> to vector<8x128xbf16>
    %c0_21 = arith.constant 0 : index
    %c0_22 = arith.constant 0 : index
    %35 = vector.load %arg8[%c0_21, %c0_22] : memref<128x128xbf16, #tpu.memory_space<vmem>>, vector<128x128xbf16>
    %cst_23 = arith.constant dense<0.000000e+00> : vector<8x128xf32>
    %36 = tpu.matmul %34, %35, %cst_23 {dimension_numbers = #tpu.dot_dimension_numbers<[1], [0], [0], [1], [0, 0, 1, 1], [], []>} : vector<8x128xbf16>, vector<128x128xbf16>, vector<8x128xf32> -> vector<8x128xf32>
    %c0_24 = arith.constant 0 : index
    %c0_25 = arith.constant 0 : index
    %37 = vector.load %arg9[%c0_24, %c0_25] : memref<1x128xf32, #tpu.memory_space<vmem>>, vector<1x128xf32>
    %38 = vector.broadcast %37 : vector<1x128xf32> to vector<8x128xf32>
    %39 = arith.addf %36, %38 : vector<8x128xf32>
    %cst_26 = arith.constant 0.000000e+00 : f32
    %40 = vector.broadcast %cst_26 : f32 to vector<8x128xf32>
    %41 = arith.cmpf oge, %39, %40 : vector<8x128xf32>
    %cst_27 = arith.constant 1.000000e-01 : f32
    %42 = vector.broadcast %cst_27 : f32 to vector<8x128xf32>
    %43 = arith.mulf %42, %39 : vector<8x128xf32>
    %44 = arith.select %41, %39, %43 : vector<8x128xi1>, vector<8x128xf32>
    %c0_28 = arith.constant 0 : index
    %c0_29 = arith.constant 0 : index
    %45 = vector.load %arg10[%c0_28, %c0_29] : memref<8x128xf32, #tpu.memory_space<vmem>>, vector<8x128xf32>
    tpu.vector_store %arg10[%c0_28, %c0_29], %44 {strides = array<i32>} : memref<8x128xf32, #tpu.memory_space<vmem>>, vector<8x128xf32>,
    return
  }
  func.func @transform_0(%arg0: i32) -> (i32, i32) {
    %c0_i32 = arith.constant 0 : i32
    %c0_i32_0 = arith.constant 0 : i32
    return %arg0, %c0_i32 : i32, i32
  }
  func.func @transform_1(%arg0: i32) -> (i32, i32) {
    %c0_i32 = arith.constant 0 : i32
    %c0_i32_0 = arith.constant 0 : i32
    %c0_i32_1 = arith.constant 0 : i32
    return %c0_i32, %c0_i32_0 : i32, i32
  }
  func.func @transform_2(%arg0: i32) -> (i32, i32) {
    %c0_i32 = arith.constant 0 : i32
    %c0_i32_0 = arith.constant 0 : i32
    %c0_i32_1 = arith.constant 0 : i32
    return %c0_i32, %c0_i32_0 : i32, i32
  }
  func.func @transform_3(%arg0: i32) -> (i32, i32) {
    %c0_i32 = arith.constant 0 : i32
    %c0_i32_0 = arith.constant 0 : i32
    %c0_i32_1 = arith.constant 0 : i32
    return %c0_i32, %c0_i32_0 : i32, i32
  }
  func.func @transform_4(%arg0: i32) -> (i32, i32) {
    %c0_i32 = arith.constant 0 : i32
    %c0_i32_0 = arith.constant 0 : i32
    %c0_i32_1 = arith.constant 0 : i32
    return %c0_i32, %c0_i32_0 : i32, i32
  }
  func.func @transform_5(%arg0: i32) -> (i32, i32) {
    %c0_i32 = arith.constant 0 : i32
    %c0_i32_0 = arith.constant 0 : i32
    %c0_i32_1 = arith.constant 0 : i32
    return %c0_i32, %c0_i32_0 : i32, i32
  }
  func.func @transform_6(%arg0: i32) -> (i32, i32) {
    %c0_i32 = arith.constant 0 : i32
    %c0_i32_0 = arith.constant 0 : i32
    %c0_i32_1 = arith.constant 0 : i32
    return %c0_i32, %c0_i32_0 : i32, i32
  }
  func.func @transform_7(%arg0: i32) -> (i32, i32) {
    %c0_i32 = arith.constant 0 : i32
    %c0_i32_0 = arith.constant 0 : i32
    %c0_i32_1 = arith.constant 0 : i32
    return %c0_i32, %c0_i32_0 : i32, i32
  }
  func.func @transform_8(%arg0: i32) -> (i32, i32) {
    %c0_i32 = arith.constant 0 : i32
    %c0_i32_0 = arith.constant 0 : i32
    %c0_i32_1 = arith.constant 0 : i32
    return %c0_i32, %c0_i32_0 : i32, i32
  }
  func.func @transform_9(%arg0: i32) -> (i32, i32) {
    %c0_i32 = arith.constant 0 : i32
    %c0_i32_0 = arith.constant 0 : i32
    return %arg0, %c0_i32 : i32, i32
  }
}

</mosaic_0001>

<bundles_post_ra>
// kernel: tpu_custom_call.1
= control target key start
LH: loop header
LB: loop body
LE: loop exit
PB: predicated region body
PF: predicated region fallthrough
CT: control target
= control target key end

     0   :  { %14 = vsyncpa [#allocation3], 0  ;;  %s876_s0 = inlined_call_operand.hbm [shape: f32[8,8], index: 0, kind: input, shape index: {}]   ;;  %s877_s1 = inlined_call_operand.hbm [shape: bf16[8,32], index: 1, kind: input, shape index: {}]   ;;  %s878_s2 = inlined_call_operand.vmem [shape: f32[1,32], index: 2, kind: input, shape index: {}]   ;;  %s879_s3 = inlined_call_operand.hbm [shape: bf16[32,64], index: 3, kind: input, shape index: {}]   ;;  %s880_s4 = inlined_call_operand.vmem [shape: f32[1,64], index: 4, kind: input, shape index: {}]   ;;  %s881_s5 = inlined_call_operand.hbm [shape: bf16[64,128], index: 5, kind: input, shape index: {}]   ;;  %s882_s6 = inlined_call_operand.vmem [shape: f32[1,128], index: 6, kind: input, shape index: {}]   ;;  %s883_s7 = inlined_call_operand.hbm [shape: bf16[128,128], index: 7, kind: input, shape index: {}]   ;;  %s884_s8 = inlined_call_operand.vmem [shape: f32[1,128], index: 8, kind: input, shape index: {}]   ;;  %s885_s9 = inlined_call_operand.hbm [shape: f32[8,128], index: 9, kind: output, shape index: {}]  }
   0x1   :  { %15 = vsyncpa [#allocation6], 0 }
   0x2   :  { %16 = vsyncpa [#allocation9], 0 }
   0x3   :  { %17 = vsyncpa [#allocation4], 0  ;;  %s700_s30 = smov [#allocation5]   ;;  %s560_s13 = scalar_lea.hbm %s877_s1, 64 }
   0x4   :  { %s34_s10 = sshll.u32 %s700_s30, 4  ;;  %p561_p0 = scmp.ne.s32.totalorder %s877_s1, %s560_s13  ;;  %s35_s10 = int_to_ptr.vmem [resolvable:$true] %s34_s10 }
   0x5   :  { %p564_p1 = scmp.lt.u32.totalorder %s560_s13, %s877_s1 }
   0x7   :  { %p566_p2 = pnand %p564_p1, %p561_p0 }
   0x9   :  { %569 = shalt.err (!%p566_p2)
}
   0xa   :  { %s570_s18 = scalar_lea.vmem %s35_s10, 64  ;;  %p575_p4 = scmp.lt.s32.totalorder %s35_s10, %s35_s10 }
   0xb   :  { %p571_p3 = scmp.ne.s32.totalorder %s35_s10, %s570_s18  ;;  %p576_p5 = scmp.lt.s32.totalorder %s570_s18, %s570_s18 }
   0xd   :  { %p577_p6 = por %p576_p5, %p575_p4 }
   0xf   :  { %p578_p7 = pnand %p577_p6, %p571_p3 }
  0x11   :  { %581 = shalt.err (!%p578_p7)
}
  0x12   :  { %37 = dma.hbm_to_vmem [thread:$0]  %s877_s1, 64, %s35_s10, [#allocation6]  }
  0x13   :  { %s701_s21 = smov [#allocation8]   ;;  %s702_s23 = smov [#allocation2]  }
  0x14   :  { %s59_s22 = sshll.u32 %s701_s21, 4  ;;  %s24_s24 = sshll.u32 %s702_s23, 4  ;;  %s60_s22 = int_to_ptr.vmem [resolvable:$true] %s59_s22  ;;  %s25_s24 = int_to_ptr.vmem [resolvable:$true] %s24_s24 }
  0x15   :  { %s582_s27 = scalar_lea.hbm %s881_s5, 512 }
  0x16   :  { %p583_p8 = scmp.ne.s32.totalorder %s881_s5, %s582_s27  ;;  %p586_p9 = scmp.lt.u32.totalorder %s582_s27, %s881_s5 }
  0x18   :  { %p588_p10 = pnand %p586_p9, %p583_p8 }
  0x1a   :  { %591 = shalt.err (!%p588_p10)
}
  0x1b   :  { %s592_s1 = scalar_lea.vmem %s60_s22, 512  ;;  %p597_p12 = scmp.lt.s32.totalorder %s60_s22, %s60_s22 }
  0x1c   :  { %p593_p11 = scmp.ne.s32.totalorder %s60_s22, %s592_s1  ;;  %p598_p13 = scmp.lt.s32.totalorder %s592_s1, %s592_s1 }
  0x1e   :  { %p599_p0 = por %p598_p13, %p597_p12 }
  0x20   :  { %p600_p1 = pnand %p599_p0, %p593_p11 }
  0x22   :  { %603 = shalt.err (!%p600_p1)
}
  0x23   :  { %s703_s10 = smov 64   ;;  %s704_s12 = smov 4  }
  0x24   :  { %65 = dma.hbm_to_vmem [thread:$0]  %s881_s5, 512, %s60_s22, [#allocation9], %s703_s10, %s703_s10, %s704_s12  }
  0x25   :  { %s604_s17 = scalar_lea.hbm %s876_s0, 128 }
  0x26   :  { %p605_p2 = scmp.ne.s32.totalorder %s876_s0, %s604_s17  ;;  %p608_p3 = scmp.lt.u32.totalorder %s604_s17, %s876_s0 }
  0x28   :  { %p610_p4 = pnand %p608_p3, %p605_p2 }
  0x2a   :  { %613 = shalt.err (!%p610_p4)
}
  0x2b   :  { %s614_s23 = scalar_lea.vmem %s25_s24, 128  ;;  %p619_p6 = scmp.lt.s32.totalorder %s25_s24, %s25_s24 }
  0x2c   :  { %p615_p5 = scmp.ne.s32.totalorder %s25_s24, %s614_s23  ;;  %p620_p7 = scmp.lt.s32.totalorder %s614_s23, %s614_s23 }
  0x2e   :  { %p621_p8 = por %p620_p7, %p619_p6 }
  0x30   :  { %p622_p9 = pnand %p621_p8, %p615_p5 }
  0x32   :  { %625 = shalt.err (!%p622_p9)
}
  0x33   :  { %27 = dma.hbm_to_vmem [thread:$0]  %s876_s0, 128, %s25_s24, [#allocation3]  }
  0x34   :  { %s705_s25 = smov [#allocation7]   ;;  %s706_s27 = smov [#allocation10]  }
  0x35   :  { %s45_s26 = sshll.u32 %s705_s25, 4  ;;  %s73_s28 = sshll.u32 %s706_s27, 4  ;;  %s46_s26 = int_to_ptr.vmem [resolvable:$true] %s45_s26  ;;  %s74_s28 = int_to_ptr.vmem [resolvable:$true] %s73_s28 }
  0x36   :  { %s626_s11 = scalar_lea.hbm %s879_s3, 256 }
  0x37   :  { %p627_p10 = scmp.ne.s32.totalorder %s879_s3, %s626_s11  ;;  %p630_p11 = scmp.lt.u32.totalorder %s626_s11, %s879_s3 }
  0x39   :  { %p632_p12 = pnand %p630_p11, %p627_p10 }
  0x3b   :  { %635 = shalt.err (!%p632_p12)
}
  0x3c   :  { %s636_s0 = scalar_lea.vmem %s46_s26, 256  ;;  %p641_p0 = scmp.lt.s32.totalorder %s46_s26, %s46_s26 }
  0x3d   :  { %p637_p13 = scmp.ne.s32.totalorder %s46_s26, %s636_s0  ;;  %p642_p1 = scmp.lt.s32.totalorder %s636_s0, %s636_s0 }
  0x3f   :  { %p643_p2 = por %p642_p1, %p641_p0 }
  0x41   :  { %p644_p3 = pnand %p643_p2, %p637_p13 }
  0x43   :  { %647 = shalt.err (!%p644_p3)
}
  0x44   :  { %51 = dma.hbm_to_vmem [thread:$0]  %s879_s3, 256, %s46_s26, [#allocation6], %s703_s10, %s703_s10, %s704_s12  }
  0x45   :  { %s648_s19 = scalar_lea.hbm %s883_s7, 1024 }
  0x46   :  { %p649_p4 = scmp.ne.s32.totalorder %s883_s7, %s648_s19  ;;  %p652_p5 = scmp.lt.u32.totalorder %s648_s19, %s883_s7 }
  0x48   :  { %p654_p6 = pnand %p652_p5, %p649_p4 }
  0x4a   :  { %657 = shalt.err (!%p654_p6)
}
  0x4b   :  { %s658_s22 = scalar_lea.vmem %s74_s28, 1024  ;;  %p663_p8 = scmp.lt.s32.totalorder %s74_s28, %s74_s28 }
  0x4c   :  { %p659_p7 = scmp.ne.s32.totalorder %s74_s28, %s658_s22  ;;  %p664_p9 = scmp.lt.s32.totalorder %s658_s22, %s658_s22 }
  0x4e   :  { %p665_p10 = por %p664_p9, %p663_p8 }
  0x50   :  { %p666_p11 = pnand %p665_p10, %p659_p7 }
  0x52   :  { %669 = shalt.err (!%p666_p11)
}
  0x53   :  { %79 = dma.hbm_to_vmem [thread:$0]  %s883_s7, 1024, %s74_s28, [#allocation9], %s703_s10, %s703_s10, %s704_s12  }
  0x54   :  { %692 = dma.done.wait [#allocation3], 128  }
  0x55   :  { %693 = vsyncadd [#allocation3], 4294967168 }
  0x56   :  { %694 = dma.done.wait [#allocation6], 320  }
  0x57   :  { %695 = vsyncadd [#allocation6], 4294966976 }
  0x58   :  { %696 = dma.done.wait [#allocation9], 1536  }
  0x59   :  { %697 = vsyncadd [#allocation9], 4294965760  ;;  %v707_v0 = vmov 0.0   ;;  %vm708_vm0 = vmmov 0   ;;  %vm112_vm1 = vcmask 1043456   ;;  %v98_v2 = vld [vmem:[#allocation2] sm:$0xff] }
  0x5a   :  { %490 = vmatprep.subr.bf16.mxu0 %v707_v0  ;;  %492 = vmatprep.mubr.msk.bf16.mxu0 %vm708_vm0, %v707_v0  ;;  %v100_v1 = vld [vmem:[#allocation5] sm:$0xf]  ;;  %v99_v4 = vpack.c.bf16 %v98_v2, %v98_v2  ;;  %vm108_vm2 = vcmask 64512   ;;  %v546_v5 = vld [vmem:[#allocation7] sm:$0xff]   ;;  %v547_v6 = vld [vmem:[#allocation7 + $0x8] sm:$0xff]   ;;  %vm183_vm4 = vcmask 261120  }
  0x5b   :  { %516 = vmatprep.subr.bf16.mxu1 %v707_v0  ;;  %532 = vmatprep.mubr.msk.bf16.mxu1 %vm708_vm0, %v707_v0  ;;  %v114_v3 = vsel %vm112_vm1, %v100_v1, 0  ;;  %v450_v7 = vld [vmem:[%s878_s2] ss:$0 sm:$0xff]  ;;  %v549_v17 = vld [vmem:[#allocation8 + $0x8] sm:$0xff]   ;;  %v550_v18 = vld [vmem:[#allocation8 + $0x10] sm:$0xff]   ;;  %vm270_vm6 = vcmask 523264  }
  0x5c   :  { %491 = vmatpush3.bf16.msra.mxu0 %v114_v3  ;;  %v548_v15 = vld [vmem:[#allocation8] sm:$0xff]   ;;  %v551_v19 = vld [vmem:[#allocation8 + $0x18] sm:$0xff]   ;;  %v553_v21 = vld [vmem:[#allocation10 + $0x8] sm:$0xff]   ;;  %s709_s29 = smov [#allocation11]  }
  0x5d   :  { %496 = vmatprep.subr.bf16.mxu0 %v707_v0  ;;  %v552_v20 = vld [vmem:[#allocation10] sm:$0xff]   ;;  %v554_v22 = vld [vmem:[#allocation10 + $0x10] sm:$0xff]   ;;  %v555_v23 = vld [vmem:[#allocation10 + $0x18] sm:$0xff]   ;;  %s439_s30 = sshll.u32 %s709_s29, 4  ;;  %s440_s30 = int_to_ptr.vmem [resolvable:$true] %s439_s30 }
  0x5e   :  { %517 = vmatpush3.bf16.msra.mxu1 %v552_v20  ;;  %v556_v24 = vld [vmem:[#allocation10 + $0x20] sm:$0xff]   ;;  %v557_v25 = vld [vmem:[#allocation10 + $0x28] sm:$0xff]   ;;  %v558_v35 = vld [vmem:[#allocation10 + $0x30] sm:$0xff]   ;;  %p675_p13 = scmp.lt.s32.totalorder %s440_s30, %s440_s30 }
  0x5f   :  { %493 = vmatmul.mubr.msk.bf16.vlgmr.msra.gmra.mrb[0].mxu0 %vm108_vm2, %v99_v4  ;;  %518 = vmatprep.subr.bf16.mxu1 %v707_v0  ;;  %v452_v26 = vld [vmem:[%s880_s4] ss:$0 sm:$0xff]  ;;  %v559_v36 = vld [vmem:[#allocation10 + $0x38] sm:$0xff]  }
  0x60   :  { %500 = vmatprep.mubr.msk.bf16.mxu0 %vm708_vm0, %v707_v0  ;;  %497 = vmatpush3.bf16.msra.mxu0 %v546_v5  ;;  %v456_v37 = vld [vmem:[%s882_s6] ss:$0 sm:$0xff]  ;;  %s670_s6 = scalar_lea.vmem %s440_s30, 128 }
  0x61   :  { %498 = vmatprep.subr.bf16.mxu0 %v707_v0  ;;  %v462_v46 = vld [vmem:[%s884_s8] ss:$0 sm:$0xff]  ;;  %p671_p12 = scmp.ne.s32.totalorder %s440_s30, %s670_s6  ;;  %p676_p0 = scmp.lt.s32.totalorder %s670_s6, %s670_s6 }
  0x62   :  { %519 = vmatpush3.bf16.msra.mxu1 %v553_v21 }
  0x63   :  { %520 = vmatprep.subr.bf16.mxu1 %v707_v0  ;;  %p677_p1 = por %p676_p0, %p675_p13 }
  0x64   :  { %499 = vmatpush3.bf16.msra.mxu0 %v547_v6 }
  0x65   :  { %504 = vmatprep.subr.bf16.mxu0 %v707_v0  ;;  %p678_p2 = pnand %p677_p1, %p671_p12 }
  0x66   :  { %521 = vmatpush3.bf16.msra.mxu1 %v554_v22 }
  0x67   :  { %522 = vmatprep.subr.bf16.mxu1 %v707_v0 }
  0x6a   :  { %523 = vmatpush3.bf16.msra.mxu1 %v555_v23 }
  0x6b   :  { %524 = vmatprep.subr.bf16.mxu1 %v707_v0 }
  0x6e   :  { %525 = vmatpush3.bf16.msra.mxu1 %v556_v24 }
  0x6f   :  { %526 = vmatprep.subr.bf16.mxu1 %v707_v0 }
  0x72   :  { %527 = vmatpush3.bf16.msra.mxu1 %v557_v25 }
  0x73   :  { %528 = vmatprep.subr.bf16.mxu1 %v707_v0 }
  0x76   :  { %529 = vmatpush3.bf16.msra.mxu1 %v558_v35 }
  0x77   :  { %530 = vmatprep.subr.bf16.mxu1 %v707_v0 }
  0x7a   :  { %531 = vmatpush3.bf16.msra.mxu1 %v559_v36 }
 0x132   :  { %v150_v8 = vpop.f32.mrb[0].mxu0 }
 0x133   :  { %v151_v9 = vadd.f32 %v450_v7, %v150_v8  ;;  %v494_v10 = vpop.f32.mrb[1].mxu0 }
 0x134   :  { %v153_v11 = vpop.f32.mrb[2].mxu0 }
 0x135   :  { %vm156_vm3 = vcmp.ge.f32.partialorder %v151_v9, 0.0  ;;  %v157_v12 = vmul.f32 0.1, %v151_v9  ;;  %v495_v13 = vpop.f32.mrb[3].mxu0 }
 0x137   :  { %v158_v14 = vsel %vm156_vm3, %v151_v9, %v157_v12 }
 0x138   :  { %v159_v16 = vpack.c.bf16 %v158_v14, %v158_v14 }
 0x13a   :  { %501 = vmatmul.mubr.msk.bf16.vlgmr.msra.gmra.mrb[4].mxu0 %vm183_vm4, %v159_v16 }
 0x13b   :  { %505 = vmatpush3.bf16.msra.mxu0 %v548_v15  ;;  %512 = vmatprep.mubr.msk.bf16.mxu0 %vm708_vm0, %v707_v0 }
 0x13c   :  { %506 = vmatprep.subr.bf16.mxu0 %v707_v0 }
 0x13f   :  { %507 = vmatpush3.bf16.msra.mxu0 %v549_v17 }
 0x140   :  { %508 = vmatprep.subr.bf16.mxu0 %v707_v0 }
 0x143   :  { %509 = vmatpush3.bf16.msra.mxu0 %v550_v18 }
 0x144   :  { %510 = vmatprep.subr.bf16.mxu0 %v707_v0 }
 0x147   :  { %511 = vmatpush3.bf16.msra.mxu0 %v551_v19 }
 0x20d   :  { %v221_v27 = vpop.f32.mrb[4].mxu0 }
 0x20e   :  { %v222_v28 = vadd.f32 %v452_v26, %v221_v27  ;;  %v502_v29 = vpop.f32.mrb[5].mxu0 }
 0x20f   :  { %v224_v30 = vpop.f32.mrb[6].mxu0 }
 0x210   :  { %vm227_vm5 = vcmp.ge.f32.partialorder %v222_v28, 0.0  ;;  %v228_v31 = vmul.f32 0.1, %v222_v28  ;;  %v503_v32 = vpop.f32.mrb[7].mxu0 }
 0x212   :  { %v229_v33 = vsel %vm227_vm5, %v222_v28, %v228_v31 }
 0x213   :  { %v230_v34 = vpack.c.bf16 %v229_v33, %v229_v33 }
 0x215   :  { %513 = vmatmul.mubr.msk.bf16.vlgmr.msra.gmra.mrb[8].mxu0 %vm270_vm6, %v230_v34 }
 0x2e8   :  { %v308_v38 = vpop.f32.mrb[8].mxu0 }
 0x2e9   :  { %v309_v39 = vadd.f32 %v456_v37, %v308_v38  ;;  %v514_v40 = vpop.f32.mrb[9].mxu0 }
 0x2ea   :  { %v311_v41 = vpop.f32.mrb[10].mxu0 }
 0x2eb   :  { %vm314_vm7 = vcmp.ge.f32.partialorder %v309_v39, 0.0  ;;  %v315_v42 = vmul.f32 0.1, %v309_v39  ;;  %v515_v43 = vpop.f32.mrb[11].mxu0 }
 0x2ed   :  { %v316_v44 = vsel %vm314_vm7, %v309_v39, %v315_v42 }
 0x2ee   :  { %v317_v45 = vpack.c.bf16 %v316_v44, %v316_v44 }
 0x2f0   :  { %533 = vmatmul.mubr.bf16.vlgmr.msra.gmra.mrb[0].mxu1 %v317_v45 }
 0x3c3   :  { %v423_v47 = vpop.f32.mrb[0].mxu1 }
 0x3c4   :  { %v424_v48 = vadd.f32 %v462_v46, %v423_v47  ;;  %v534_v49 = vpop.f32.mrb[1].mxu1 }
 0x3c5   :  { %v426_v50 = vpop.f32.mrb[2].mxu1 }
 0x3c6   :  { %v430_v51 = vmul.f32 0.1, %v424_v48  ;;  %v535_v52 = vpop.f32.mrb[3].mxu1  ;;  %vm429_vm8 = vcmp.ge.f32.partialorder %v424_v48, 0.0 }
 0x3c8   :  { %v431_v53 = vsel %vm429_vm8, %v424_v48, %v430_v51 }
 0x3c9   :  { %432 = vst [vmem:[#allocation11] sm:$0xff] %v431_v53 }
 0x3ca   :  { %681 = shalt.err (!%p678_p2)
}
 0x3cb   :  { %s682_s1 = scalar_lea.hbm %s885_s9, 128 }
 0x3cc   :  { %p683_p3 = scmp.ne.s32.totalorder %s885_s9, %s682_s1  ;;  %p686_p4 = scmp.lt.u32.totalorder %s682_s1, %s885_s9 }
 0x3ce   :  { %p688_p5 = pnand %p686_p4, %p683_p3 }
 0x3d0   :  { %691 = shalt.err (!%p688_p5)
}
 0x3d1   :  { %442 = dma.vmem_to_hbm [thread:$0]  %s440_s30, 128, %s885_s9, [#allocation4]  }
 0x3d2   :  { %698 = dma.done.wait [#allocation4], 128  }
 0x3d3   :  { %699 = vsyncadd [#allocation4], 4294967168 }
 0x3d4   :  { %446 = vsyncpa [#allocation3], 1 }
 0x3d5   :  { %447 = vsyncpa [#allocation6], 1 }
 0x3d6   :  { %448 = vsyncpa [#allocation9], 1 }
 0x3d7   :  { %449 = vsyncpa [#allocation4], 1 }

</bundles_post_ra>
